<compile_context>
chip_gen: v5e
topology: v5e:2x2
jax: 0.10.0
libtpu: 0.0.40
codegen_flags: <defaults>
</compile_context>

<pallas_src>
import functools

import jax
import jax.numpy as jnp
from jax.experimental import pallas as pl
from jax.experimental.pallas import tpu as pltpu


def _ls_ce_kernel(x_ref, t_ref, out_ref, *, confidence, smoothing, total_n,
                  tile_n, ragged):
    x = x_ref[...]                                              # (TN, C) native dtype
    c = x.shape[-1]

    # Row max stays in the native dtype (packed vregs for bf16); only the
    # exp argument is promoted to f32.
    m = jnp.max(x, axis=-1, keepdims=True)                      # (TN, 1)
    p = jnp.exp((x - m).astype(jnp.float32))                    # (TN, C) f32

    ones_f32 = jnp.ones((c, 1), jnp.float32)
    ones_nat = jnp.ones((c, 1), x.dtype)

    # Full-C reductions on the MXU (vector-extended slot) instead of XLU/VALU.
    sum_exp = jnp.dot(p, ones_f32, preferred_element_type=jnp.float32)   # (TN,1)
    lse = m.astype(jnp.float32) + jnp.log(sum_exp)                       # (TN,1)
    row_sum = jnp.dot(x, ones_nat, preferred_element_type=jnp.float32)   # (TN,1)

    # Gather logit at target index: one-hot select (VPU) + MXU lane reduce.
    tgt = t_ref[...]                                            # (TN, 1) int32
    cols = jax.lax.broadcasted_iota(jnp.int32, x.shape, 1)      # (TN, C)
    masked = jnp.where(cols == tgt, x, jnp.zeros_like(x))       # (TN, C) native
    x_tgt = jnp.dot(masked, ones_nat, preferred_element_type=jnp.float32)

    nll_loss = lse - x_tgt                                      # (TN, 1)
    smooth_loss = lse - row_sum * (1.0 / c)                     # (TN, 1)
    loss = confidence * nll_loss + smoothing * smooth_loss      # (TN, 1) f32

    if ragged:
        # Only needed when the last tile runs past N.  Padded rows may hold
        # garbage, but each row's reductions stay inside that row, so zeroing
        # the per-row loss here is sufficient (no NaN/inf can leak across).
        i = pl.program_id(0)
        row_ids = i * tile_n + jax.lax.broadcasted_iota(jnp.int32, (tile_n, 1), 0)
        loss = jnp.where(row_ids < total_n, loss, 0.0)

    out_ref[...] = loss


def _cdiv(a, b):
    return (a + b - 1) // b


def _round_up(a, b):
    return _cdiv(a, b) * b


def _vmem_capacity_bytes():
    try:
        return int(pltpu.get_tpu_info().vmem_capacity_bytes)
    except Exception:
        return 64 << 20  # conservative (v7x per-TC VMEM)


def _pick_tile_n(n, c, itemsize, budget):
    # Packed-sublane multiple: 8 for f32, 16 for bf16, 32 for int8/fp8.
    pack = max(8, 32 // max(itemsize, 1))
    # Honest per-row VMEM cost:
    #   x: 2 double-buffered blocks of c*itemsize
    #   in-kernel f32 temporaries (~3 full-width arrays: p, masked, iota)
    #   target + output (tile_n, 1) blocks, lane-padded to 128 lanes (512 B/row),
    #   each double-buffered.
    per_row = 2 * c * itemsize + 3 * c * 4 + 2 * 2 * 512
    rows_fit = budget // max(per_row, 1)
    # Aim for ~4 MiB per x block; never more than 8192 rows.
    target_rows = (4 << 20) // max(c * itemsize, 1)
    tile_n = min(rows_fit, target_rows, 8192)
    # Keep grid_n >= 2 when possible so v7x can shard the parallel axis
    # across both TensorCores (harmless on single-TC chips).
    half = _round_up(_cdiv(n, 2), pack)
    tile_n = min(tile_n, half, _round_up(n, pack))
    tile_n = max(pack, (tile_n // pack) * pack)
    return tile_n


def label_smoothing_cross_entropy(x, target, smoothing=0.1, tile_n=None):
    """Pallas equivalent of LabelSmoothingCrossEntropy.forward.

    x: (N, C) float, target: (N,) int. Returns a scalar float32 loss.
    Out-of-range targets yield x_tgt = 0 (documented divergence from torch).
    """
    if not 0.0 <= smoothing < 1.0:
        raise ValueError(f"smoothing ({smoothing}) must be in [0, 1)")
    if x.ndim != 2 or target.ndim != 1:
        raise ValueError("x must be (N, C) and target must be (N,)")
    if x.shape[0] != target.shape[0]:
        raise ValueError("batch mismatch between x and target")

    N, C = x.shape
    confidence = 1.0 - smoothing
    itemsize = jnp.dtype(x.dtype).itemsize

    vmem_cap = _vmem_capacity_bytes()
    budget = min(vmem_cap // 2, 32 << 20)

    if tile_n is None:
        tile_n = _pick_tile_n(N, C, itemsize, budget)

    grid_n = _cdiv(N, tile_n)
    n_rows_out = grid_n * tile_n
    ragged = (N % tile_n) != 0

    target2d = target.astype(jnp.int32).reshape(-1, 1)

    # Explicit scoped-VMEM budget (double-buffered x, lane-padded (tile_n,1)
    # target/output blocks, in-kernel f32 temporaries, slack).  Hard-capped at
    # 48 MiB, which is below per-TensorCore capacity on every chip (incl. v7x).
    x_block = tile_n * C * itemsize
    pad1_block = tile_n * 512
    interm = 3 * tile_n * C * 4
    need = 2 * x_block + 4 * pad1_block + interm + (4 << 20)
    vmem_limit = int(min(max(need, 16 << 20), 48 << 20))

    # TODO(synk): for very large vocabularies (pack * C blocks exceeding the
    # VMEM budget) add a class-axis grid dimension with a streaming
    # (flash-style) logsumexp instead of full-C blocks.

    cost = pl.CostEstimate(
        flops=int(10 * N * C),
        transcendentals=int(N * C),
        bytes_accessed=int(N * C * itemsize + N * 4 + n_rows_out * 4),
    )

    kernel = functools.partial(
        _ls_ce_kernel,
        confidence=confidence,
        smoothing=smoothing,
        total_n=N,
        tile_n=tile_n,
        ragged=ragged,
    )

    per_row = pl.pallas_call(
        kernel,
        out_shape=jax.ShapeDtypeStruct((n_rows_out, 1), jnp.float32),
        grid_spec=pltpu.PrefetchScalarGridSpec(
            num_scalar_prefetch=0,
            grid=(grid_n,),
            in_specs=[
                pl.BlockSpec((tile_n, C), lambda i: (i, 0)),
                pl.BlockSpec((tile_n, 1), lambda i: (i, 0)),
            ],
            out_specs=pl.BlockSpec((tile_n, 1), lambda i: (i, 0)),
        ),
        compiler_params=pltpu.CompilerParams(
            dimension_semantics=("parallel",),
            vmem_limit_bytes=vmem_limit,
        ),
        cost_estimate=cost,
    )(x, target2d)

    # Padded rows are written as 0, so summing everything is exact; divide by
    # the true N for the mean.
    return jnp.sum(per_row) / jnp.float32(N)


def _reference(x, target, smoothing=0.1):
    confidence = 1.0 - smoothing
    logprobs = jax.nn.log_softmax(x.astype(jnp.float32), axis=-1)
    nll = -jnp.take_along_axis(logprobs, target[:, None].astype(jnp.int32), axis=-1)[:, 0]
    smooth = -jnp.mean(logprobs, axis=-1)
    return jnp.mean(confidence * nll + smoothing * smooth)


if __name__ == "__main__":
    key = jax.random.PRNGKey(0)
    kx, kt = jax.random.split(key)

    # Small shapes consistent with (N, C) logits / (N,) targets.
    N, C = 8, 32
    x = jax.random.normal(kx, (N, C), dtype=jnp.float32)
    target = jax.random.randint(kt, (N,), 0, C, dtype=jnp.int32)

    loss = label_smoothing_cross_entropy(x, target, smoothing=0.1)
    loss = jax.block_until_ready(loss)
    ref = _reference(x, target, smoothing=0.1)
    assert jnp.allclose(loss, ref, atol=1e-5, rtol=1e-5), (loss, ref)

    # Ragged-N path (exercises the in-kernel last-tile mask).
    N2, C2 = 37, 128
    x2 = jax.random.normal(kx, (N2, C2), dtype=jnp.float32)
    t2 = jax.random.randint(kt, (N2,), 0, C2, dtype=jnp.int32)
    loss2 = jax.block_until_ready(label_smoothing_cross_entropy(x2, t2, smoothing=0.1))
    ref2 = _reference(x2, t2, smoothing=0.1)
    assert jnp.allclose(loss2, ref2, atol=1e-5, rtol=1e-5), (loss2, ref2)

    # bf16 input path (packed max/sub/select + bf16 MXU row-sum); loose tol.
    N3, C3 = 16, 64
    x3 = jax.random.normal(kx, (N3, C3), dtype=jnp.bfloat16)
    t3 = jax.random.randint(kt, (N3,), 0, C3, dtype=jnp.int32)
    loss3 = jax.block_until_ready(label_smoothing_cross_entropy(x3, t3, smoothing=0.1))
    ref3 = _reference(x3, t3, smoothing=0.1)
    assert jnp.allclose(loss3, ref3, atol=1e-1, rtol=5e-2), (loss3, ref3)

    print("KERNEL_OK")
</pallas_src>

<mosaic_0001>
module attributes {stable_mosaic.version = 11 : i64} {
  func.func @_ls_ce_kernel(%arg0: i32, %arg1: memref<8x32xf32, #tpu.memory_space<vmem>>, %arg2: memref<8x1xi32, #tpu.memory_space<vmem>>, %arg3: memref<8x1xf32, #tpu.memory_space<vmem>>) attributes {dimension_semantics = [#tpu.dimension_semantics<parallel>], iteration_bounds = array<i64: 1>, scalar_prefetch = 0 : i64, scratch_operands = 0 : i64, tpu.core_type = #tpu.core_type<tc>, window_params = [{transform_indices = @transform_0, window_bounds = array<i64: 8, 32>}, {transform_indices = @transform_1, window_bounds = array<i64: 8, 1>}, {transform_indices = @transform_2, window_bounds = array<i64: 8, 1>}]} {
    %c0 = arith.constant 0 : index
    %c0_0 = arith.constant 0 : index
    %0 = vector.load %arg1[%c0, %c0_0] : memref<8x32xf32, #tpu.memory_space<vmem>>, vector<8x32xf32>
    %cst = arith.constant dense<0xFF800000> : vector<8xf32>
    %1 = vector.multi_reduction <maximumf>, %0, %cst [1] : vector<8x32xf32> to vector<8xf32>
    %2 = vector.shape_cast %1 : vector<8xf32> to vector<8x1xf32>
    %3 = vector.broadcast %2 : vector<8x1xf32> to vector<8x32xf32>
    %4 = arith.subf %0, %3 : vector<8x32xf32>
    %5 = math.exp %4 : vector<8x32xf32>
    %cst_1 = arith.constant 1.000000e+00 : f32
    %6 = vector.broadcast %cst_1 : f32 to vector<32x1xf32>
    %cst_2 = arith.constant 1.000000e+00 : f32
    %7 = vector.broadcast %cst_2 : f32 to vector<32x1xf32>
    %cst_3 = arith.constant dense<0.000000e+00> : vector<8x1xf32>
    %8 = tpu.matmul %5, %6, %cst_3 {dimension_numbers = #tpu.dot_dimension_numbers<[1], [0], [0], [1], [0, 0, 1, 1], [], []>} : vector<8x32xf32>, vector<32x1xf32>, vector<8x1xf32> -> vector<8x1xf32>
    %9 = math.log %8 : vector<8x1xf32>
    %10 = arith.addf %2, %9 : vector<8x1xf32>
    %cst_4 = arith.constant dense<0.000000e+00> : vector<8x1xf32>
    %11 = tpu.matmul %0, %7, %cst_4 {dimension_numbers = #tpu.dot_dimension_numbers<[1], [0], [0], [1], [0, 0, 1, 1], [], []>} : vector<8x32xf32>, vector<32x1xf32>, vector<8x1xf32> -> vector<8x1xf32>
    %c0_5 = arith.constant 0 : index
    %c0_6 = arith.constant 0 : index
    %12 = vector.load %arg2[%c0_5, %c0_6] : memref<8x1xi32, #tpu.memory_space<vmem>>, vector<8x1xi32>
    %13 = tpu.iota {dimensions = array<i32: 1>} : vector<8x32xi32>
    %14 = vector.broadcast %12 : vector<8x1xi32> to vector<8x32xi32>
    %15 = arith.cmpi eq, %13, %14 : vector<8x32xi32>
    %cst_7 = arith.constant 0.000000e+00 : f32
    %16 = vector.broadcast %cst_7 : f32 to vector<8x32xf32>
    %17 = arith.select %15, %0, %16 : vector<8x32xi1>, vector<8x32xf32>
    %cst_8 = arith.constant dense<0.000000e+00> : vector<8x1xf32>
    %18 = tpu.matmul %17, %7, %cst_8 {dimension_numbers = #tpu.dot_dimension_numbers<[1], [0], [0], [1], [0, 0, 1, 1], [], []>} : vector<8x32xf32>, vector<32x1xf32>, vector<8x1xf32> -> vector<8x1xf32>
    %19 = arith.subf %10, %18 : vector<8x1xf32>
    %cst_9 = arith.constant 3.125000e-02 : f32
    %20 = vector.broadcast %cst_9 : f32 to vector<8x1xf32>
    %21 = arith.mulf %11, %20 : vector<8x1xf32>
    %22 = arith.subf %10, %21 : vector<8x1xf32>
    %cst_10 = arith.constant 0.899999976 : f32
    %23 = vector.broadcast %cst_10 : f32 to vector<8x1xf32>
    %24 = arith.mulf %23, %19 : vector<8x1xf32>
    %cst_11 = arith.constant 1.000000e-01 : f32
    %25 = vector.broadcast %cst_11 : f32 to vector<8x1xf32>
    %26 = arith.mulf %25, %22 : vector<8x1xf32>
    %27 = arith.addf %24, %26 : vector<8x1xf32>
    %c0_12 = arith.constant 0 : index
    %c0_13 = arith.constant 0 : index
    %28 = vector.load %arg3[%c0_12, %c0_13] : memref<8x1xf32, #tpu.memory_space<vmem>>, vector<8x1xf32>
    tpu.vector_store %arg3[%c0_12, %c0_13], %27 {strides = array<i32>} : memref<8x1xf32, #tpu.memory_space<vmem>>, vector<8x1xf32>,
    return
  }
  func.func @transform_0(%arg0: i32) -> (i32, i32) {
    %c0_i32 = arith.constant 0 : i32
    %c0_i32_0 = arith.constant 0 : i32
    return %arg0, %c0_i32 : i32, i32
  }
  func.func @transform_1(%arg0: i32) -> (i32, i32) {
    %c0_i32 = arith.constant 0 : i32
    %c0_i32_0 = arith.constant 0 : i32
    return %arg0, %c0_i32 : i32, i32
  }
  func.func @transform_2(%arg0: i32) -> (i32, i32) {
    %c0_i32 = arith.constant 0 : i32
    %c0_i32_0 = arith.constant 0 : i32
    return %arg0, %c0_i32 : i32, i32
  }
}

</mosaic_0001>

<bundles_post_ra>
// kernel: tpu_custom_call.1
= control target key start
LH: loop header
LB: loop body
LE: loop exit
PB: predicated region body
PF: predicated region fallthrough
CT: control target
= control target key end

     0   :  { %vm12_vm0 = vcmask 261120   ;;  %v121_v1 = vmov 0   ;;  %v122_v4 = vmov 1.0   ;;  %v69_v9 = vlaneseq  ;;  %s151_s0 = inlined_call_operand.vmem [shape: f32[8,32], index: 0, kind: input, shape index: {}]   ;;  %s152_s1 = inlined_call_operand.vmem [shape: s32[8,1], index: 1, kind: input, shape index: {}]   ;;  %s153_s2 = inlined_call_operand.vmem [shape: f32[8,1], index: 2, kind: output, shape index: {}]  }
   0x1   :  { %v11_v0 = vld [vmem:[%s151_s0] sm:$0xff]  ;;  %116 = vset.pattern.permute.xlu0 %v121_v1  ;;  %34 = vmatpush.msra.mxu0 %v122_v4  ;;  %vm105_vm2 = vcmask 7168  }
   0x2   :  { %v13_v2 = vsel %vm12_vm0, %v11_v0, -inf  ;;  %v68_v3 = vld [vmem:[%s152_s1] sm:$0xff]  ;;  %60 = vmatpush.msra.mxu1 %v122_v4  ;;  %91 = vmatpush.msra.mxu2 %v122_v4  ;;  %v70_v10 = vand.u32 127, %v69_v9 }
   0x3   :  { %14 = vmax.xlane.f32.xlu0 %v13_v2  ;;  %35 = vmatpush.msra.mxu0 %v122_v4 }
   0x4   :  { %61 = vmatpush.msra.mxu1 %v122_v4  ;;  %92 = vmatpush.msra.mxu2 %v122_v4 }
   0x5   :  { %36 = vmatpush.msra.mxu0 %v122_v4 }
   0x6   :  { %62 = vmatpush.msra.mxu1 %v122_v4  ;;  %93 = vmatpush.msra.mxu2 %v122_v4 }
   0x7   :  { %37 = vmatpush.msra.mxu0 %v122_v4 }
   0x8   :  { %63 = vmatpush.msra.mxu1 %v122_v4  ;;  %94 = vmatpush.msra.mxu2 %v122_v4 }
   0x9   :  { %112 = vmatmul.msk.f32.vlgmr.msra.gmra.mxu1 %vm12_vm0, %v11_v0 }
  0x17   :  { %72 = vperm.xlu0 %116, %v68_v3  }
  0x76   :  { %v15_v5 = vpop.xlane.xlu0 %14 }
  0x77   :  { %v16_v6 = vsub.f32 %v11_v0, %v15_v5 }
  0x79   :  { %v17_v7 = vmul.f32 1.442695, %v16_v6 }
  0x7b   :  { %117 = vpow2.f32 %v17_v7 }
  0x81   :  { %v118_v8 = vpop.eup %117 }
  0x82   :  { %111 = vmatmul.msk.f32.vlgmr.msra.gmra.mxu0 %vm12_vm0, %v118_v8 }
  0x86   :  { %v65_v16 = vpop.f32.mrf.mxu1 }
  0x87   :  { %v100_v18 = vmul.f32 0.03125, %v65_v16 }
  0x89   :  { %v73_v11 = vpop.permute.xlu0 %72 }
  0x8a   :  { %vm74_vm1 = vcmp.eq.s32.totalorder %v70_v10, %v73_v11 }
  0x8b   :  { %v75_v12 = vsel %vm74_vm1, %v11_v0, 0.0 }
  0x8c   :  { %113 = vmatmul.msk.f32.vlgmr.msra.gmra.mxu2 %vm12_vm0, %v75_v12 }
  0xff   :  { %v39_v13 = vpop.f32.mrf.mxu0 }
 0x100   :  { %119 = vlog2.f32 %v39_v13 }
 0x106   :  { %v120_v14 = vpop.eup %119 }
 0x107   :  { %v43_v15 = vmul.f32 0.6931472, %v120_v14 }
 0x109   :  { %v44_v17 = vadd.f32 %v43_v15, %v15_v5 }
 0x10b   :  { %v101_v19 = vsub.f32 %v44_v17, %v100_v18 }
 0x10d   :  { %v103_v22 = vmul.f32 0.1, %v101_v19 }
 0x10f   :  { %v96_v20 = vpop.f32.mrf.mxu2 }
 0x110   :  { %v99_v21 = vsub.f32 %v44_v17, %v96_v20 }
 0x112   :  { %v102_v23 = vmul.f32 0.9, %v99_v21 }
 0x114   :  { %v104_v24 = vadd.f32 %v103_v22, %v102_v23 }
 0x116   :  { %106 = vst.msk [vmem:[%s153_s2] sm:$0xff] %vm105_vm2, %v104_v24 }

</bundles_post_ra>
